<compile_context>
chip_gen: v5e
topology: v5e:2x2
jax: 0.10.0
libtpu: 0.0.40
codegen_flags: <defaults>
</compile_context>

<pallas_src>
import jax
import jax.numpy as jnp
from jax.experimental import pallas as pl
from jax.experimental.pallas import tpu as pltpu


def _silu(x):
    # x * sigmoid(x); the 1/(1+e^-x) divide goes to the single-slot approx
    # EUP reciprocal (vrcp) instead of a multi-step full-precision divide.
    return x * pl.reciprocal(1.0 + jnp.exp(-x), approx=True)


def custom_nn_kernel(x_ref, w0_ref, b0_ref, mu_ref, isig_ref,
                     w1_ref, b1_ref, wot_ref, bo_ref, out_ref):
    # Shapes (batch on lanes):
    #   x_ref   : (n_in, TB)
    #   w0_ref  : (h0, n_in)   b0/mu/isig : (h0, 1)
    #   w1_ref  : (h1, h0)     b1         : (h1, 1)
    #   wot_ref : (h1, n_out)  bo         : (n_out, 1)
    #   out_ref : (n_out, TB)
    x = x_ref[...]
    inputx = x[0:1, :]                      # == x[:, 0] in the original layout

    # ---- layer 0: Linear(n_in -> h0) as VPU broadcast-FMAs (K is tiny; an
    #      MXU matmul with K=2 would waste the systolic array). ----
    w0 = w0_ref[...]                        # (h0, n_in)
    h = b0_ref[...] + w0[:, 0:1] * x[0:1, :]
    for k in range(1, w0.shape[1]):         # static unroll, n_in is tiny
        h = h + w0[:, k:k + 1] * x[k:k + 1, :]

    # ---- Gaussian RBF gate applied right after layer 0 (the i == 0 branch) ----
    d = inputx - mu_ref[...]                # (h0, TB)
    h = h * jnp.exp(-(d * d) * isig_ref[...])
    h = _silu(h)                            # actv() == SiLU

    # ---- Linear(h0 -> h1): lane-dense MXU matmul (N = TB) ----
    h = jnp.dot(w1_ref[...], h, preferred_element_type=jnp.float32) + b1_ref[...]
    h = _silu(h)

    # ---- fc_out: Linear(h1 -> n_out) ----
    wot = wot_ref[...]                      # (h1, n_out)
    if wot.shape[1] == 1:
        # n_out == 1: VPU multiply + cross-sublane reduce, skip the MXU.
        out = jnp.sum(wot * h, axis=0, keepdims=True)
    else:
        out = jax.lax.dot_general(
            wot, h, dimension_numbers=(((0,), (0,)), ((), ())),
            preferred_element_type=jnp.float32)
    out_ref[...] = out + bo_ref[...]


def custom_nn_forward(x, params, *, tb=512):
    """x: (B, n_in) float32.  Returns (B, n_out) float32."""
    B, n_in = x.shape
    h0 = params["w0"].shape[0]
    h1 = params["w1"].shape[0]
    n_out = params["wo"].shape[0]

    # Batch goes on the lane axis; tile must be a multiple of 128 lanes and we
    # avoid over-padding tiny batches.
    tb = min(tb, 128 * pl.cdiv(B, 128))
    tb = max(128, (tb // 128) * 128)
    bp = pl.cdiv(B, tb) * tb
    x_t = jnp.zeros((n_in, bp), jnp.float32).at[:, :B].set(x.T)

    inv_sig2 = 1.0 / (params["sigma"] ** 2)     # hoist the divide out of the kernel
    wot = params["wo"].T                        # (h1, n_out)

    full = lambda i: (0, 0)                     # weights: resident across grid steps
    flops = 2 * bp * (n_in * h0 + h0 * h1 + h1 * n_out) + 10 * bp * h0
    transc = bp * (2 * h0 + h1)                 # gate exp + two sigmoids
    bytes_acc = 4 * (x_t.size + n_out * bp + params["w0"].size
                     + params["w1"].size + params["wo"].size
                     + 4 * h0 + h1 + n_out)

    out_t = pl.pallas_call(
        custom_nn_kernel,
        out_shape=jax.ShapeDtypeStruct((n_out, bp), jnp.float32),
        grid=(bp // tb,),
        in_specs=[
            pl.BlockSpec((n_in, tb), lambda i: (0, i)),   # x (per-tile)
            pl.BlockSpec((h0, n_in), full),               # W0
            pl.BlockSpec((h0, 1), full),                  # b0
            pl.BlockSpec((h0, 1), full),                  # mu
            pl.BlockSpec((h0, 1), full),                  # 1/sigma^2
            pl.BlockSpec((h1, h0), full),                 # W1
            pl.BlockSpec((h1, 1), full),                  # b1
            pl.BlockSpec((h1, n_out), full),              # Wo^T
            pl.BlockSpec((n_out, 1), full),               # bo
        ],
        out_specs=pl.BlockSpec((n_out, tb), lambda i: (0, i)),
        compiler_params=pltpu.CompilerParams(
            dimension_semantics=("parallel",)),
        cost_estimate=pl.CostEstimate(
            flops=int(flops), transcendentals=int(transc),
            bytes_accessed=int(bytes_acc)),
    )(x_t, params["w0"], params["b0"], params["mu"], inv_sig2,
      params["w1"], params["b1"], wot, params["bo"])

    return out_t[:, :B].T                                  # back to (B, n_out)


def init_params(key, n_input_units, hidden_units, n_output_units):
    """Synthetic init matching CustomNN.__init__ shapes (PyTorch weight order)."""
    h0, h1 = hidden_units
    ks = jax.random.split(key, 6)
    scale = 0.1
    return {
        # nn.Linear(n_input_units, h0): weight (h0, n_in), bias (h0,)
        "w0": scale * jax.random.normal(ks[0], (h0, n_input_units), jnp.float32),
        "b0": scale * jax.random.normal(ks[1], (h0, 1), jnp.float32),
        # self.mu = torch.linspace(0, 1, h0); self.sigma = ones(h0) * 0.2
        "mu": jnp.linspace(0.0, 1.0, h0, dtype=jnp.float32).reshape(h0, 1),
        "sigma": 0.2 * jnp.ones((h0, 1), jnp.float32),
        # nn.Linear(h0, h1)
        "w1": scale * jax.random.normal(ks[2], (h1, h0), jnp.float32),
        "b1": scale * jax.random.normal(ks[3], (h1, 1), jnp.float32),
        # fc_out: nn.Linear(h1, n_output_units)
        "wo": scale * jax.random.normal(ks[4], (n_output_units, h1), jnp.float32),
        "bo": scale * jax.random.normal(ks[5], (n_output_units, 1), jnp.float32),
    }


def custom_nn_ref(x, p):
    """Pure-JAX reference mirroring the PyTorch forward exactly."""
    inputx = x[:, 0].reshape(-1, 1)
    h = x @ p["w0"].T + p["b0"].T
    h = h * jnp.exp(-((inputx - p["mu"].T) ** 2) / (p["sigma"].T ** 2))
    h = h * jax.nn.sigmoid(h)
    h = h @ p["w1"].T + p["b1"].T
    h = h * jax.nn.sigmoid(h)
    return h @ p["wo"].T + p["bo"].T


if __name__ == "__main__":
    key = jax.random.PRNGKey(0)
    k_in, k_par = jax.random.split(key)

    # Bundle solver feeds (N, Om_m) -> 2 input units; one output (x_s).
    B, n_in, hidden, n_out = 300, 2, (32, 32), 1   # B not a tile multiple: exercises padding
    x = jax.random.uniform(k_in, (B, n_in), jnp.float32, minval=-1.0, maxval=1.0)
    params = init_params(k_par, n_in, hidden, n_out)

    out = custom_nn_forward(x, params, tb=256)      # grid of 2 batch tiles
    out = jax.block_until_ready(out)

    ref = custom_nn_ref(x, params)
    assert out.shape == (B, n_out)
    err = float(jnp.max(jnp.abs(out - ref)))
    # SiLU uses the approx EUP reciprocal, so allow a slightly looser tolerance.
    assert err < 1e-3, f"mismatch vs reference: max abs err = {err}"

    print("KERNEL_OK")
</pallas_src>

<mosaic_0001>
module attributes {stable_mosaic.version = 11 : i64} {
  func.func @custom_nn_kernel(%arg0: i32, %arg1: memref<2x256xf32, #tpu.memory_space<vmem>>, %arg2: memref<32x2xf32, #tpu.memory_space<vmem>>, %arg3: memref<32x1xf32, #tpu.memory_space<vmem>>, %arg4: memref<32x1xf32, #tpu.memory_space<vmem>>, %arg5: memref<32x1xf32, #tpu.memory_space<vmem>>, %arg6: memref<32x32xf32, #tpu.memory_space<vmem>>, %arg7: memref<32x1xf32, #tpu.memory_space<vmem>>, %arg8: memref<32x1xf32, #tpu.memory_space<vmem>>, %arg9: memref<1x1xf32, #tpu.memory_space<vmem>>, %arg10: memref<1x256xf32, #tpu.memory_space<vmem>>) attributes {dimension_semantics = [#tpu.dimension_semantics<parallel>], iteration_bounds = array<i64: 2>, scalar_prefetch = 0 : i64, scratch_operands = 0 : i64, tpu.core_type = #tpu.core_type<tc>, window_params = [{transform_indices = @transform_0, window_bounds = array<i64: 2, 256>}, {pipeline_mode = #tpu.pipeline_mode<synchronous>, transform_indices = @transform_1, window_bounds = array<i64: 32, 2>}, {pipeline_mode = #tpu.pipeline_mode<synchronous>, transform_indices = @transform_2, window_bounds = array<i64: 32, 1>}, {pipeline_mode = #tpu.pipeline_mode<synchronous>, transform_indices = @transform_3, window_bounds = array<i64: 32, 1>}, {pipeline_mode = #tpu.pipeline_mode<synchronous>, transform_indices = @transform_4, window_bounds = array<i64: 32, 1>}, {pipeline_mode = #tpu.pipeline_mode<synchronous>, transform_indices = @transform_5, window_bounds = array<i64: 32, 32>}, {pipeline_mode = #tpu.pipeline_mode<synchronous>, transform_indices = @transform_6, window_bounds = array<i64: 32, 1>}, {pipeline_mode = #tpu.pipeline_mode<synchronous>, transform_indices = @transform_7, window_bounds = array<i64: 32, 1>}, {pipeline_mode = #tpu.pipeline_mode<synchronous>, transform_indices = @transform_8, window_bounds = array<i64: 1, 1>}, {transform_indices = @transform_9, window_bounds = array<i64: 1, 256>}]} {
    %c0 = arith.constant 0 : index
    %c0_0 = arith.constant 0 : index
    %0 = vector.load %arg1[%c0, %c0_0] : memref<2x256xf32, #tpu.memory_space<vmem>>, vector<2x256xf32>
    %1 = vector.extract_strided_slice %0 {offsets = [0, 0], sizes = [1, 256], strides = [1, 1]} : vector<2x256xf32> to vector<1x256xf32>
    %c0_1 = arith.constant 0 : index
    %c0_2 = arith.constant 0 : index
    %2 = vector.load %arg2[%c0_1, %c0_2] : memref<32x2xf32, #tpu.memory_space<vmem>>, vector<32x2xf32>
    %c0_3 = arith.constant 0 : index
    %c0_4 = arith.constant 0 : index
    %3 = vector.load %arg3[%c0_3, %c0_4] : memref<32x1xf32, #tpu.memory_space<vmem>>, vector<32x1xf32>
    %4 = vector.extract_strided_slice %2 {offsets = [0, 0], sizes = [32, 1], strides = [1, 1]} : vector<32x2xf32> to vector<32x1xf32>
    %5 = vector.extract_strided_slice %0 {offsets = [0, 0], sizes = [1, 256], strides = [1, 1]} : vector<2x256xf32> to vector<1x256xf32>
    %6 = vector.broadcast %4 : vector<32x1xf32> to vector<32x256xf32>
    %7 = vector.broadcast %5 : vector<1x256xf32> to vector<32x256xf32>
    %8 = arith.mulf %6, %7 : vector<32x256xf32>
    %9 = vector.broadcast %3 : vector<32x1xf32> to vector<32x256xf32>
    %10 = arith.addf %9, %8 : vector<32x256xf32>
    %11 = vector.extract_strided_slice %2 {offsets = [0, 1], sizes = [32, 1], strides = [1, 1]} : vector<32x2xf32> to vector<32x1xf32>
    %12 = vector.extract_strided_slice %0 {offsets = [1, 0], sizes = [1, 256], strides = [1, 1]} : vector<2x256xf32> to vector<1x256xf32>
    %13 = vector.broadcast %11 : vector<32x1xf32> to vector<32x256xf32>
    %14 = vector.broadcast %12 : vector<1x256xf32> to vector<32x256xf32>
    %15 = arith.mulf %13, %14 : vector<32x256xf32>
    %16 = arith.addf %10, %15 : vector<32x256xf32>
    %c0_5 = arith.constant 0 : index
    %c0_6 = arith.constant 0 : index
    %17 = vector.load %arg4[%c0_5, %c0_6] : memref<32x1xf32, #tpu.memory_space<vmem>>, vector<32x1xf32>
    %18 = vector.broadcast %1 : vector<1x256xf32> to vector<32x256xf32>
    %19 = vector.broadcast %17 : vector<32x1xf32> to vector<32x256xf32>
    %20 = arith.subf %18, %19 : vector<32x256xf32>
    %21 = arith.mulf %20, %20 : vector<32x256xf32>
    %cst = arith.constant 0.000000e+00 : f32
    %22 = vector.broadcast %cst : f32 to vector<32x256xf32>
    %23 = arith.subf %22, %21 : vector<32x256xf32>
    %c0_7 = arith.constant 0 : index
    %c0_8 = arith.constant 0 : index
    %24 = vector.load %arg5[%c0_7, %c0_8] : memref<32x1xf32, #tpu.memory_space<vmem>>, vector<32x1xf32>
    %25 = vector.broadcast %24 : vector<32x1xf32> to vector<32x256xf32>
    %26 = arith.mulf %23, %25 : vector<32x256xf32>
    %27 = math.exp %26 : vector<32x256xf32>
    %28 = arith.mulf %16, %27 : vector<32x256xf32>
    %cst_9 = arith.constant 0.000000e+00 : f32
    %29 = vector.broadcast %cst_9 : f32 to vector<32x256xf32>
    %30 = arith.subf %29, %28 : vector<32x256xf32>
    %31 = math.exp %30 : vector<32x256xf32>
    %cst_10 = arith.constant 1.000000e+00 : f32
    %32 = vector.broadcast %cst_10 : f32 to vector<32x256xf32>
    %33 = arith.addf %32, %31 : vector<32x256xf32>
    %34 = tpu.reciprocal %33 {approx = true} : vector<32x256xf32> -> vector<32x256xf32>
    %35 = arith.mulf %28, %34 : vector<32x256xf32>
    %c0_11 = arith.constant 0 : index
    %c0_12 = arith.constant 0 : index
    %36 = vector.load %arg6[%c0_11, %c0_12] : memref<32x32xf32, #tpu.memory_space<vmem>>, vector<32x32xf32>
    %cst_13 = arith.constant dense<0.000000e+00> : vector<32x256xf32>
    %37 = tpu.matmul %36, %35, %cst_13 {dimension_numbers = #tpu.dot_dimension_numbers<[1], [0], [0], [1], [0, 0, 1, 1], [], []>} : vector<32x32xf32>, vector<32x256xf32>, vector<32x256xf32> -> vector<32x256xf32>
    %c0_14 = arith.constant 0 : index
    %c0_15 = arith.constant 0 : index
    %38 = vector.load %arg7[%c0_14, %c0_15] : memref<32x1xf32, #tpu.memory_space<vmem>>, vector<32x1xf32>
    %39 = vector.broadcast %38 : vector<32x1xf32> to vector<32x256xf32>
    %40 = arith.addf %37, %39 : vector<32x256xf32>
    %cst_16 = arith.constant 0.000000e+00 : f32
    %41 = vector.broadcast %cst_16 : f32 to vector<32x256xf32>
    %42 = arith.subf %41, %40 : vector<32x256xf32>
    %43 = math.exp %42 : vector<32x256xf32>
    %cst_17 = arith.constant 1.000000e+00 : f32
    %44 = vector.broadcast %cst_17 : f32 to vector<32x256xf32>
    %45 = arith.addf %44, %43 : vector<32x256xf32>
    %46 = tpu.reciprocal %45 {approx = true} : vector<32x256xf32> -> vector<32x256xf32>
    %47 = arith.mulf %40, %46 : vector<32x256xf32>
    %c0_18 = arith.constant 0 : index
    %c0_19 = arith.constant 0 : index
    %48 = vector.load %arg8[%c0_18, %c0_19] : memref<32x1xf32, #tpu.memory_space<vmem>>, vector<32x1xf32>
    %49 = vector.broadcast %48 : vector<32x1xf32> to vector<32x256xf32>
    %50 = arith.mulf %49, %47 : vector<32x256xf32>
    %cst_20 = arith.constant dense<0.000000e+00> : vector<256xf32>
    %51 = vector.multi_reduction <add>, %50, %cst_20 [0] : vector<32x256xf32> to vector<256xf32>
    %52 = vector.shape_cast %51 : vector<256xf32> to vector<1x256xf32>
    %c0_21 = arith.constant 0 : index
    %c0_22 = arith.constant 0 : index
    %53 = vector.load %arg9[%c0_21, %c0_22] : memref<1x1xf32, #tpu.memory_space<vmem>>, vector<1x1xf32>
    %54 = vector.broadcast %53 : vector<1x1xf32> to vector<1x256xf32>
    %55 = arith.addf %52, %54 : vector<1x256xf32>
    %c0_23 = arith.constant 0 : index
    %c0_24 = arith.constant 0 : index
    %56 = vector.load %arg10[%c0_23, %c0_24] : memref<1x256xf32, #tpu.memory_space<vmem>>, vector<1x256xf32>
    tpu.vector_store %arg10[%c0_23, %c0_24], %55 {strides = array<i32>} : memref<1x256xf32, #tpu.memory_space<vmem>>, vector<1x256xf32>,
    return
  }
  func.func @transform_0(%arg0: i32) -> (i32, i32) {
    %c0_i32 = arith.constant 0 : i32
    %c0_i32_0 = arith.constant 0 : i32
    return %c0_i32, %arg0 : i32, i32
  }
  func.func @transform_1(%arg0: i32) -> (i32, i32) {
    %c0_i32 = arith.constant 0 : i32
    %c0_i32_0 = arith.constant 0 : i32
    %c0_i32_1 = arith.constant 0 : i32
    return %c0_i32, %c0_i32_0 : i32, i32
  }
  func.func @transform_2(%arg0: i32) -> (i32, i32) {
    %c0_i32 = arith.constant 0 : i32
    %c0_i32_0 = arith.constant 0 : i32
    %c0_i32_1 = arith.constant 0 : i32
    return %c0_i32, %c0_i32_0 : i32, i32
  }
  func.func @transform_3(%arg0: i32) -> (i32, i32) {
    %c0_i32 = arith.constant 0 : i32
    %c0_i32_0 = arith.constant 0 : i32
    %c0_i32_1 = arith.constant 0 : i32
    return %c0_i32, %c0_i32_0 : i32, i32
  }
  func.func @transform_4(%arg0: i32) -> (i32, i32) {
    %c0_i32 = arith.constant 0 : i32
    %c0_i32_0 = arith.constant 0 : i32
    %c0_i32_1 = arith.constant 0 : i32
    return %c0_i32, %c0_i32_0 : i32, i32
  }
  func.func @transform_5(%arg0: i32) -> (i32, i32) {
    %c0_i32 = arith.constant 0 : i32
    %c0_i32_0 = arith.constant 0 : i32
    %c0_i32_1 = arith.constant 0 : i32
    return %c0_i32, %c0_i32_0 : i32, i32
  }
  func.func @transform_6(%arg0: i32) -> (i32, i32) {
    %c0_i32 = arith.constant 0 : i32
    %c0_i32_0 = arith.constant 0 : i32
    %c0_i32_1 = arith.constant 0 : i32
    return %c0_i32, %c0_i32_0 : i32, i32
  }
  func.func @transform_7(%arg0: i32) -> (i32, i32) {
    %c0_i32 = arith.constant 0 : i32
    %c0_i32_0 = arith.constant 0 : i32
    %c0_i32_1 = arith.constant 0 : i32
    return %c0_i32, %c0_i32_0 : i32, i32
  }
  func.func @transform_8(%arg0: i32) -> (i32, i32) {
    %c0_i32 = arith.constant 0 : i32
    %c0_i32_0 = arith.constant 0 : i32
    %c0_i32_1 = arith.constant 0 : i32
    return %c0_i32, %c0_i32_0 : i32, i32
  }
  func.func @transform_9(%arg0: i32) -> (i32, i32) {
    %c0_i32 = arith.constant 0 : i32
    %c0_i32_0 = arith.constant 0 : i32
    return %c0_i32, %arg0 : i32, i32
  }
}

</mosaic_0001>

<bundles_post_ra>
// kernel: tpu_custom_call.1
= control target key start
LH: loop header
LB: loop body
LE: loop exit
PB: predicated region body
PF: predicated region fallthrough
CT: control target
= control target key end

     0   :  { %s1412_s0 = inlined_call_operand.vmem [shape: f32[2,512], index: 0, kind: input, shape index: {}]   ;;  %s1413_s1 = inlined_call_operand.vmem [shape: f32[32,2], index: 1, kind: input, shape index: {}]   ;;  %s1414_s2 = inlined_call_operand.vmem [shape: f32[32,1], index: 2, kind: input, shape index: {}]   ;;  %s1415_s3 = inlined_call_operand.vmem [shape: f32[32,1], index: 3, kind: input, shape index: {}]   ;;  %s1416_s4 = inlined_call_operand.vmem [shape: f32[32,1], index: 4, kind: input, shape index: {}]   ;;  %s1417_s5 = inlined_call_operand.vmem [shape: f32[32,32], index: 5, kind: input, shape index: {}]   ;;  %s1418_s6 = inlined_call_operand.vmem [shape: f32[32,1], index: 6, kind: input, shape index: {}]   ;;  %s1419_s7 = inlined_call_operand.vmem [shape: f32[32,1], index: 7, kind: input, shape index: {}]   ;;  %s1420_s8 = inlined_call_operand.<no memory space> [shape: f32[1,1], index: 8, kind: input, shape index: {}]   ;;  %s1421_s9 = inlined_call_operand.hbm [shape: f32[1,512], index: 9, kind: output, shape index: {}]  }
   0x1   :  { %v14_v0 = vstv %s1420_s8 }
   0x2   :  { %15 = vst [vmem:[#allocation2] sm:$0x1] %v14_v0 }
   0x3   :  { %16 = vsyncpa [#allocation4], 0 }
   0x4   :  { %18 = vsyncpa [#allocation4 + $0x1], 0  ;;  %s1164_s11 = smov 0   ;;  %s1166_s12 = smov 0  }
   0x5   :  { %s1168_s13 = smov 0   ;;  %s1170_s14 = smov 0  }
   0x6 LB: > { %s889_s8 = sadd.s32 4294967295, %s1107_s14   ;;  %s890_s15 = sadd.s32 4294967294, %s1107_s14   ;;  %s1107_s14 = sphi %s1170_s14, %s1427_s14   ;;  %s1103_s13 = sphi %s1168_s13, %s1426_s13   ;;  %s1099_s12 = sphi %s1166_s12, %s1425_s12   ;;  %s1095_s11 = sphi %s1164_s11, %s1424_s11  }
   0x7   : > { %s1187_s16 = sadd.s32 1, %s1107_s14   ;;  %s225_s17 = sadd.s32 1, %s1103_s13 }
   0x8   : > { %s222_s18 = ssub.s32 %s1107_s14, %s1187_s16  ;;  %p235_p0 = scmp.ne.s32.totalorder %s1103_s13, %s1099_s12 }
   0x9   : > { %p223_p1 = scmp.eq.s32.totalorder %s222_s18, 0  ;;  %p236_p2 = scmp.eq.s32.totalorder %s889_s8, 1 }
   0xa   : > { %p241_p3 = scmp.ne.s32.totalorder %s1099_s12, %s1095_s11  ;;  %p242_p4 = scmp.eq.s32.totalorder %s890_s15, 1 }
   0xb   : > { %s1199_s19 = scalar_select %p223_p1, %s1103_s13, %s225_s17  }
   0xc   : > { %p1201_p5 = por %p236_p2, %p235_p0  ;;  %p1205_p6 = por %p242_p4, %p241_p3 }
   0xd   : > { %p893_p7 = scmp.ge.s32.totalorder %s1107_s14, 1  ;;  %p293_p8 = scmp.lt.s32.totalorder %s1107_s14, 3 }
   0xf   : > { %p294_p9 = pnand %p893_p7, %p293_p8 }
  0x10   : > { %s1270_s18 = sshll.u32 (!%p294_p9), %s889_s8, 1  ;;  %s326_s10 = sand.u32 (!%p294_p9), 1, %s1099_s12  }
  0x11   : > { %297 = sbr.rel (%p294_p9) target bundleno = 412 (0x19c), region = 56  ;;  %p330_p10 = scmp.lt.s32.totalorder (!%p294_p9), %s1270_s18, 3 }
  0x12   : > { %s894_s15 = sshll.u32 (!%p294_p9), %s326_s10, 1  ;;  %s816_s8 = scalar_lea.sflag (!%p294_p9), [#allocation4], %s326_s10 }
  0x13   : > { %s328_s24 = scalar_lea.vmem (!%p294_p9), [#allocation3], %s894_s15  ;;  %s1065_s30 = scalar_lea.hbm (!%p294_p9), %s1421_s9, 4 }
  0x14   : > { %s828_s25 = sshll.u32 (!%p294_p9), %s328_s24, 4  ;;  %s829_s25 = int_to_ptr.vmem [resolvable:$true] %s828_s25 }
  0x16   : > { %v447_v1 = vld [vmem:[%s1415_s3 + $0x8] sm:$0xff]  ;;  %v449_v2 = vld [vmem:[%s1415_s3 + $0x18] sm:$0xff]  ;;  %v1109_v3 = vmov 0   ;;  %v446_v5 = vld [vmem:[%s1415_s3] sm:$0xff]  ;;  %v1110_v13 = vmov 1   ;;  %s331_s22 = scalar_select %p330_p10, %s1270_s18, 3 }
  0x17   : > { %959 = vset.pattern.permute.xlu1 %v1109_v3  ;;  %958 = vset.pattern.permute.xlu0 %v1109_v3  ;;  %v497_v4 = vld [vmem:[%s1416_s4 + $0x18] sm:$0xff]  ;;  %v448_v6 = vld [vmem:[%s1415_s3 + $0x10] sm:$0xff]  ;;  %v495_v8 = vld [vmem:[%s1416_s4 + $0x8] sm:$0xff]  ;;  %vm626_vm0 = vcmask 261120   ;;  %vm807_vm1 = vcmask 1040384  }
  0x18   : > { %457 = vperm.xlu1 %959, %v447_v1   ;;  %467 = vperm.xlu0 %958, %v449_v2   ;;  %v496_v7 = vld [vmem:[%s1416_s4 + $0x10] sm:$0xff]  ;;  %v340_v9 = vld [vmem:[%s1413_s1 + $0x18] sm:$0xff]  ;;  %v494_v10 = vld [vmem:[%s1416_s4] sm:$0xff]  ;;  %s896_s23 = sshll.u32 %s331_s22, 1 }
  0x19   : > { %960 = vset.pattern.permute.xlu2 %v1109_v3  ;;  %v344_v11 = vld [vmem:[%s1414_s2 + $0x18] sm:$0xff]  ;;  %v339_v12 = vld [vmem:[%s1413_s1 + $0x10] sm:$0xff]  ;;  %v338_v15 = vld [vmem:[%s1413_s1 + $0x8] sm:$0xff]  ;;  %s333_s26 = scalar_lea.vmem %s1412_s0, %s896_s23  ;;  %s826_s23 = scalar_lea.hbm %s1421_s9, %s1270_s18 }
  0x1a   : > { %515 = vperm.xlu2 %960, %v497_v4   ;;  %v343_v14 = vld [vmem:[%s1414_s2 + $0x10] sm:$0xff]  ;;  %v342_v16 = vld [vmem:[%s1414_s2 + $0x8] sm:$0xff]  ;;  %v337_v17 = vld [vmem:[%s1413_s1] sm:$0xff] }
  0x1b   : > { %v341_v18 = vld [vmem:[%s1414_s2] sm:$0xff]  ;;  %v603_v19 = vld [vmem:[%s1418_s6 + $0x8] sm:$0xff]  ;;  %v748_v21 = vld [vmem:[%s1419_s7 + $0x18] sm:$0xff] }
  0x1c   : > { %v745_v20 = vld [vmem:[%s1419_s7] sm:$0xff] }
  0x1d   : > { %v336_v23 = vld [vmem:[%s333_s26] sm:$0xf]  ;;  %s830_s26 = sshll.u32 %s826_s23, 4  ;;  %s831_s26 = int_to_ptr.hbm [resolvable:$true] %s830_s26 }
  0x1e   : > { %v366_v24 = vperm.slane %v336_v23, 0  ;;  %v367_v25 = vperm.slane %v336_v23, 2  ;;  %v424_v46 = vperm.slane %v336_v23, 1  ;;  %v425_v47 = vperm.slane %v336_v23, 3  ;;  %s1059_s27 = sshra.s32 %s831_s26, 4  ;;  %s1060_s27 = int_to_ptr.hbm [resolvable:$true] %s1059_s27 }
  0x1f   : > { %s1061_s18 = scalar_lea.hbm %s1060_s27, 2  ;;  %p1066_p0 = scmp.lt.s32.totalorder %s1060_s27, %s1421_s9 }
  0x20   : > { %452 = vperm.xlu1 %959, %v446_v5   ;;  %462 = vperm.xlu0 %958, %v448_v6   ;;  %v1277_v27 = vperm.slane %v366_v24, 0  ;;  %v1279_v28 = vperm.slane %v367_v25, 0  ;;  %v1288_v56 = vperm.slane %v424_v46, 1  ;;  %v1290_v57 = vperm.slane %v425_v47, 1  ;;  %p1062_p11 = scmp.ne.s32.totalorder %s1060_s27, %s1061_s18  ;;  %p1067_p1 = scmp.lt.s32.totalorder %s1065_s30, %s1061_s18 }
  0x22   : > { %510 = vperm.xlu2 %960, %v496_v7   ;;  %p1063_p12 = pnand %p1062_p11, %p1201_p5  ;;  %p1068_p2 = por %p1067_p1, %p1066_p0 }
  0x24   : > { %p1064_p13 = pneg %p1063_p12 }
  0x26   : > { %p1069_p3 = pnand %p1068_p2, %p1064_p13 }
  0x28   : > { %505 = vperm.xlu0 %958, %v495_v8   ;;  %362 = vperm.xlu1 %959, %v340_v9  }
  0x2a   : > { %500 = vperm.xlu2 %960, %v494_v10  }
  0x30   : > { %397 = vperm.xlu1 %959, %v344_v11   ;;  %357 = vperm.xlu0 %958, %v339_v12  }
  0x32   : > { %961 = vset.pattern.permute.xlu2 %v1110_v13 }
  0x33   : > { %421 = vperm.xlu2 %961, %v340_v9  }
  0x38   : > { %392 = vperm.xlu1 %959, %v343_v14   ;;  %352 = vperm.xlu0 %958, %v338_v15  }
  0x3b   : > { %417 = vperm.xlu2 %961, %v339_v12  }
  0x40   : > { %387 = vperm.xlu1 %959, %v342_v16   ;;  %347 = vperm.xlu0 %958, %v337_v17  }
  0x43   : > { %413 = vperm.xlu2 %961, %v338_v15  }
  0x48   : > { %962 = vset.pattern.permute.xlu1 %v1110_v13  ;;  %382 = vperm.xlu0 %958, %v341_v18  }
  0x49   : > { %409 = vperm.xlu1 %962, %v337_v17  }
  0x4b   : > { %963 = vset.pattern.permute.xlu2 %v1109_v3 }
  0x50   : > { %613 = vperm.xlu0 %958, %v603_v19  }
  0x51   : > { %964 = vset.pattern.permute.xlu1 %v1109_v3 }
  0x58   : > { %751 = vperm.xlu0 %958, %v745_v20  }
  0x60   : > { %766 = vperm.xlu0 %958, %v748_v21  }
  0x74   : > { %v516_v22 = vpop.permute.xlu2 %515 }
  0x7c   : > { %v511_v26 = vpop.permute.xlu2 %510 }
  0x84   : > { %v1283_v35 = vpop.permute.xlu2 %500 }
  0x8a   : > { %v458_v29 = vpop.permute.xlu1 %457  ;;  %v468_v30 = vpop.permute.xlu0 %467 }
  0x8b   : > { %v476_v31 = vsub.f32 %v1277_v27, %v468_v30  ;;  %v477_v32 = vsub.f32 %v1279_v28, %v468_v30  ;;  %v472_v48 = vsub.f32 %v1277_v27, %v458_v29  ;;  %v473_v58 = vsub.f32 %v1279_v28, %v458_v29 }
  0x8d   : > { %v484_v33 = vmul.f32 %v476_v31, %v476_v31  ;;  %v485_v34 = vmul.f32 %v477_v32, %v477_v32  ;;  %v422_v53 = vpop.permute.xlu2 %421  ;;  %v480_v59 = vmul.f32 %v472_v48, %v472_v48  ;;  %v481_v4 = vmul.f32 %v473_v58, %v473_v58 }
  0x8e   : > { %v436_v0 = vmul.f32 %v1288_v56, %v422_v53  ;;  %v437_v1 = vmul.f32 %v1290_v57, %v422_v53 }
  0x8f   : > { %v492_v38 = vsub.f32 0.0, %v484_v33  ;;  %v493_v39 = vsub.f32 0.0, %v485_v34  ;;  %v488_v5 = vsub.f32 0.0, %v480_v59  ;;  %v489_v20 = vsub.f32 0.0, %v481_v4 }
  0x91   : > { %v524_v42 = vmul.f32 %v516_v22, %v492_v38  ;;  %v525_v44 = vmul.f32 %v516_v22, %v493_v39 }
  0x92   : > { %v453_v36 = vpop.permute.xlu1 %452  ;;  %v463_v37 = vpop.permute.xlu0 %462 }
  0x93   : > { %v474_v40 = vsub.f32 %v1277_v27, %v463_v37  ;;  %v475_v41 = vsub.f32 %v1279_v28, %v463_v37  ;;  %v538_v51 = vmul.f32 1.442695, %v524_v42  ;;  %v540_v54 = vmul.f32 1.442695, %v525_v44 }
  0x94   : > { %v470_v60 = vsub.f32 %v1277_v27, %v453_v36  ;;  %v471_v61 = vsub.f32 %v1279_v28, %v453_v36 }
  0x95   : > { %v482_v43 = vmul.f32 %v474_v40, %v474_v40  ;;  %v483_v45 = vmul.f32 %v475_v41, %v475_v41  ;;  %965 = vpow2.f32 %v538_v51  ;;  %v418_v16 = vpop.permute.xlu2 %417 }
  0x96   : > { %967 = vpow2.f32 %v540_v54  ;;  %v478_v6 = vmul.f32 %v470_v60, %v470_v60  ;;  %v479_v9 = vmul.f32 %v471_v61, %v471_v61  ;;  %v434_v22 = vmul.f32 %v1288_v56, %v418_v16 }
  0x97   : > { %v490_v52 = vsub.f32 0.0, %v482_v43  ;;  %v491_v55 = vsub.f32 0.0, %v483_v45  ;;  %v435_v30 = vmul.f32 %v1290_v57, %v418_v16 }
  0x98   : > { %v486_v21 = vsub.f32 0.0, %v478_v6  ;;  %v487_v23 = vsub.f32 0.0, %v479_v9 }
  0x99   : > { %v522_v62 = vmul.f32 %v511_v26, %v490_v52  ;;  %v523_v63 = vmul.f32 %v511_v26, %v491_v55 }
  0x9a   : > { %v506_v49 = vpop.permute.xlu0 %505  ;;  %v363_v50 = vpop.permute.xlu1 %362  ;;  %v518_v36 = vmul.f32 %v1283_v35, %v486_v21  ;;  %v519_v41 = vmul.f32 %v1283_v35, %v487_v23 }
  0x9b   : > { %v378_v2 = vmul.f32 %v1277_v27, %v363_v50  ;;  %v379_v3 = vmul.f32 %v1279_v28, %v363_v50  ;;  %v534_v10 = vmul.f32 1.442695, %v522_v62  ;;  %v536_v13 = vmul.f32 1.442695, %v523_v63  ;;  %v966_v15 = vpop.eup %965 }
  0x9c   : > { %v520_v14 = vmul.f32 %v506_v49, %v488_v5  ;;  %v968_v19 = vpop.eup %967  ;;  %v521_v26 = vmul.f32 %v506_v49, %v489_v20  ;;  %v526_v49 = vmul.f32 1.442695, %v518_v36  ;;  %v528_v52 = vmul.f32 1.442695, %v519_v41 }
  0x9d   : > { %969 = vpow2.f32 %v534_v10  ;;  %v414_v53 = vpop.permute.xlu2 %413 }
  0x9e   : > { %971 = vpow2.f32 %v536_v13  ;;  %v530_v29 = vmul.f32 1.442695, %v520_v14  ;;  %v532_v42 = vmul.f32 1.442695, %v521_v26  ;;  %v432_v62 = vmul.f32 %v1288_v56, %v414_v53 }
  0x9f   : > { %v433_v63 = vmul.f32 %v1290_v57, %v414_v53 }
  0xa0   : > { %973 = vpow2.f32 %v530_v29 }
  0xa2   : > { %v398_v7 = vpop.permute.xlu1 %397  ;;  %v358_v8 = vpop.permute.xlu0 %357 }
  0xa3   : > { %v406_v11 = vadd.f32 %v398_v7, %v378_v2  ;;  %v407_v12 = vadd.f32 %v398_v7, %v379_v3  ;;  %v376_v31 = vmul.f32 %v1277_v27, %v358_v8  ;;  %v377_v32 = vmul.f32 %v1279_v28, %v358_v8  ;;  %v970_v45 = vpop.eup %969 }
  0xa4   : > { %v972_v48 = vpop.eup %971 }
  0xa5   : > { %v444_v17 = vadd.f32 %v436_v0, %v406_v11  ;;  %v445_v18 = vadd.f32 %v437_v1, %v407_v12 }
  0xa6   : > { %v974_v61 = vpop.eup %973 }
  0xa7   : > { %v1300_v24 = vmul.f32 %v966_v15, %v444_v17  ;;  %v1302_v25 = vmul.f32 %v968_v19, %v445_v18 }
  0xa9   : > { %v556_v33 = vsub.f32 0.0, %v1300_v24  ;;  %v557_v34 = vsub.f32 0.0, %v1302_v25 }
  0xaa   : > { %v393_v37 = vpop.permute.xlu1 %392  ;;  %v353_v38 = vpop.permute.xlu0 %352 }
  0xab   : > { %v404_v39 = vadd.f32 %v393_v37, %v376_v31  ;;  %v405_v40 = vadd.f32 %v393_v37, %v377_v32  ;;  %v570_v43 = vmul.f32 1.442695, %v556_v33  ;;  %v572_v44 = vmul.f32 1.442695, %v557_v34 }
  0xac   : > { %v374_v35 = vmul.f32 %v1277_v27, %v353_v38  ;;  %v375_v54 = vmul.f32 %v1279_v28, %v353_v38 }
  0xad   : > { %v442_v46 = vadd.f32 %v434_v22, %v404_v39  ;;  %v443_v47 = vadd.f32 %v435_v30, %v405_v40  ;;  %975 = vpow2.f32 %v570_v43 }
  0xae   : > { %977 = vpow2.f32 %v572_v44 }
  0xaf   : > { %v1311_v50 = vmul.f32 %v970_v45, %v442_v46  ;;  %v1313_v51 = vmul.f32 %v972_v48, %v443_v47  ;;  %979 = vpow2.f32 %v532_v42 }
  0xb0   : > { %981 = vpow2.f32 %v526_v49  ;;  %v602_v49 = vld [vmem:[%s1418_s6] sm:$0xff] }
  0xb1   : > { %v554_v55 = vsub.f32 0.0, %v1311_v50  ;;  %v555_v58 = vsub.f32 0.0, %v1313_v51  ;;  %983 = vpow2.f32 %v528_v52  ;;  %608 = vperm.xlu2 %963, %v602_v49  }
  0xb2   : > { %v388_v59 = vpop.permute.xlu1 %387  ;;  %v348_v60 = vpop.permute.xlu0 %347 }
  0xb3   : > { %v402_v0 = vadd.f32 %v388_v59, %v374_v35  ;;  %v403_v1 = vadd.f32 %v388_v59, %v375_v54  ;;  %v976_v2 = vpop.eup %975  ;;  %v566_v3 = vmul.f32 1.442695, %v554_v55  ;;  %v568_v8 = vmul.f32 1.442695, %v555_v58  ;;  %v795_v54 = vld [vmem:[#allocation2] sm:$0x1] }
  0xb4   : > { %v978_v4 = vpop.eup %977  ;;  %v580_v7 = vadd.f32 1.0, %v976_v2  ;;  %v372_v14 = vmul.f32 %v1277_v27, %v348_v60  ;;  %v373_v15 = vmul.f32 %v1279_v28, %v348_v60  ;;  %v604_v28 = vld [vmem:[%s1418_s6 + $0x10] sm:$0xff]  ;;  %v605_v55 = vld [vmem:[%s1418_s6 + $0x18] sm:$0xff] }
  0xb5   : > { %v440_v5 = vadd.f32 %v432_v62, %v402_v0  ;;  %v441_v6 = vadd.f32 %v433_v63, %v403_v1  ;;  %v980_v9 = vpop.eup %979  ;;  %v581_v10 = vadd.f32 1.0, %v978_v4  ;;  %985 = vpow2.f32 %v566_v3  ;;  %618 = vperm.xlu1 %964, %v604_v28   ;;  %v747_v0 = vld [vmem:[%s1419_s7 + $0x10] sm:$0xff] }
  0xb6   : > { %987 = vrcp.f32 %v580_v7  ;;  %v982_v13 = vpop.eup %981  ;;  %v599_v7 = vld [vmem:[%s1417_s5 + $0x8] sm:$0xff] }
  0xb7   : > { %v1321_v11 = vmul.f32 %v974_v61, %v440_v5  ;;  %v1323_v12 = vmul.f32 %v980_v9, %v441_v6  ;;  %989 = vrcp.f32 %v581_v10  ;;  %v984_v18 = vpop.eup %983  ;;  %v598_v5 = vld [vmem:[%s1417_s5] sm:$0xff]  ;;  %v600_v6 = vld [vmem:[%s1417_s5 + $0x10] sm:$0xff] }
  0xb8   : > { %991 = vpow2.f32 %v568_v8  ;;  %v601_v8 = vld [vmem:[%s1417_s5 + $0x18] sm:$0xff] }
  0xb9   : > { %v552_v16 = vsub.f32 0.0, %v1321_v11  ;;  %v553_v17 = vsub.f32 0.0, %v1323_v12  ;;  %623 = vperm.xlu2 %963, %v605_v55  }
  0xba   : > { %v383_v19 = vpop.permute.xlu0 %382 }
  0xbb   : > { %v400_v20 = vadd.f32 %v383_v19, %v372_v14  ;;  %v401_v21 = vadd.f32 %v383_v19, %v373_v15  ;;  %v410_v22 = vpop.permute.xlu1 %409  ;;  %v562_v23 = vmul.f32 1.442695, %v552_v16  ;;  %v564_v26 = vmul.f32 1.442695, %v553_v17  ;;  %v986_v29 = vpop.eup %985 }
  0xbc   : > { %v430_v30 = vmul.f32 %v1288_v56, %v410_v22  ;;  %v431_v27 = vmul.f32 %v1290_v57, %v410_v22  ;;  %v988_v31 = vpop.eup %987  ;;  %v578_v32 = vadd.f32 1.0, %v986_v29 }
  0xbd   : > { %993 = vpow2.f32 %v562_v23  ;;  %v990_v33 = vpop.eup %989  ;;  %v596_v37 = vmul.f32 %v988_v31, %v1300_v24 }
  0xbe   : > { %v438_v34 = vadd.f32 %v430_v30, %v400_v20  ;;  %v439_v36 = vadd.f32 %v431_v27, %v401_v21  ;;  %995 = vpow2.f32 %v564_v26  ;;  %v992_v38 = vpop.eup %991  ;;  %v597_v39 = vmul.f32 %v990_v33, %v1302_v25  ;;  %v746_v25 = vld [vmem:[%s1419_s7 + $0x8] sm:$0xff] }
  0xbf   : > { %997 = vrcp.f32 %v578_v32  ;;  %651 = vmatpush.msra.mxu0 %v596_v37  ;;  %909 = vmatpush.msra.mxu2 %v596_v37  ;;  %v579_v56 = vadd.f32 1.0, %v992_v38 }
  0xc0   : > { %v542_v57 = vmul.f32 %v982_v13, %v438_v34  ;;  %v543_v40 = vmul.f32 %v984_v18, %v439_v36  ;;  %680 = vmatpush.msra.mxu1 %v597_v39  ;;  %913 = vmatpush.msra.mxu3 %v597_v39 }
  0xc1   : > { %999 = vrcp.f32 %v579_v56  ;;  %756 = vperm.xlu1 %964, %v746_v25   ;;  %761 = vperm.xlu2 %963, %v747_v0  }
  0xc2   : > { %v550_v41 = vsub.f32 0.0, %v542_v57  ;;  %v551_v42 = vsub.f32 0.0, %v543_v40  ;;  %v614_v22 = vpop.permute.xlu0 %613 }
  0xc3   : > { %v994_v43 = vpop.eup %993 }
  0xc4   : > { %v996_v44 = vpop.eup %995  ;;  %v576_v45 = vadd.f32 1.0, %v994_v43  ;;  %v558_v24 = vmul.f32 1.442695, %v550_v41  ;;  %v560_v48 = vmul.f32 1.442695, %v551_v42 }
  0xc5   : > { %v998_v46 = vpop.eup %997  ;;  %v577_v47 = vadd.f32 1.0, %v996_v44 }
  0xc6   : > { %v594_v52 = vmul.f32 %v998_v46, %v1311_v50  ;;  %1001 = vrcp.f32 %v576_v45 }
  0xc7   : > { %1003 = vrcp.f32 %v577_v47  ;;  %v1000_v53 = vpop.eup %999 }
  0xc8   : > { %652 = vmatpush.msra.mxu0 %v594_v52  ;;  %910 = vmatpush.msra.mxu2 %v594_v52  ;;  %1005 = vpow2.f32 %v558_v24  ;;  %v595_v35 = vmul.f32 %v1000_v53, %v1313_v51 }
  0xc9   : > { %1007 = vpow2.f32 %v560_v48  ;;  %798 = vperm.xlu1 %964, %v795_v54  }
  0xca   : > { %681 = vmatpush.msra.mxu1 %v595_v35  ;;  %914 = vmatpush.msra.mxu3 %v595_v35 }
  0xcc   : > { %v1002_v58 = vpop.eup %1001 }
  0xcd   : > { %v1004_v50 = vpop.eup %1003  ;;  %v592_v59 = vmul.f32 %v1002_v58, %v1321_v11 }
  0xce   : > { %v1006_v60 = vpop.eup %1005  ;;  %v593_v61 = vmul.f32 %v1004_v50, %v1323_v12 }
  0xcf   : > { %v1008_v62 = vpop.eup %1007  ;;  %653 = vmatpush.msra.mxu0 %v592_v59  ;;  %911 = vmatpush.msra.mxu2 %v592_v59  ;;  %v574_v51 = vadd.f32 1.0, %v1006_v60 }
  0xd0   : > { %682 = vmatpush.msra.mxu1 %v593_v61  ;;  %915 = vmatpush.msra.mxu3 %v593_v61  ;;  %v575_v63 = vadd.f32 1.0, %v1008_v62  ;;  %v752_v61 = vpop.permute.xlu0 %751 }
  0xd1   : > { %1009 = vrcp.f32 %v574_v51 }
  0xd2   : > { %1011 = vrcp.f32 %v575_v63 }
  0xd7   : > { %v1010_v1 = vpop.eup %1009 }
  0xd8   : > { %v1012_v2 = vpop.eup %1011  ;;  %v590_v3 = vmul.f32 %v1010_v1, %v542_v57 }
  0xd9   : > { %v591_v4 = vmul.f32 %v1012_v2, %v543_v40 }
  0xda   : > { %654 = vmatpush.msra.mxu0 %v590_v3  ;;  %912 = vmatpush.msra.mxu2 %v590_v3 }
  0xdb   : > { %683 = vmatpush.msra.mxu1 %v591_v4  ;;  %916 = vmatpush.msra.mxu3 %v591_v4 }
  0xdc   : > { %897 = vmatmul.msk.f32.vlgmr.msra.gmra.mxu0 %vm626_vm0, %v598_v5  ;;  %899 = vmatmul.msk.f32.vlgmr.msra.gmra.mxu2 %vm626_vm0, %v600_v6 }
  0xdd   : > { %901 = vmatmul.msk.f32.vlgmr.msra.gmra.mxu1 %vm626_vm0, %v598_v5  ;;  %903 = vmatmul.msk.f32.vlgmr.msra.gmra.mxu3 %vm626_vm0, %v600_v6 }
  0xe4   : > { %898 = vmatmul.msk.f32.gmra.mxu0 %vm626_vm0, %v599_v7  ;;  %900 = vmatmul.msk.f32.gmra.mxu2 %vm626_vm0, %v601_v8 }
  0xe5   : > { %902 = vmatmul.msk.f32.gmra.mxu1 %vm626_vm0, %v599_v7  ;;  %904 = vmatmul.msk.f32.gmra.mxu3 %vm626_vm0, %v601_v8 }
 0x10b   : > { %v609_v9 = vpop.permute.xlu2 %608 }
 0x113   : > { %v624_v39 = vpop.permute.xlu2 %623 }
 0x127   : > { %v619_v17 = vpop.permute.xlu1 %618 }
 0x133   : > { %v757_v3 = vpop.permute.xlu1 %756 }
 0x159   : > { %v656_v10 = vpop.f32.mrf.mxu0 }
 0x15a   : > { %v1364_v11 = vadd.f32 %v656_v10, %v609_v9  ;;  %v685_v12 = vpop.f32.mrf.mxu1 }
 0x15b   : > { %v1366_v13 = vadd.f32 %v685_v12, %v609_v9 }
 0x15c   : > { %v697_v14 = vsub.f32 0.0, %v1364_v11 }
 0x15d   : > { %v698_v15 = vsub.f32 0.0, %v1366_v13 }
 0x15e   : > { %v705_v16 = vmul.f32 1.442695, %v697_v14 }
 0x15f   : > { %v707_v18 = vmul.f32 1.442695, %v698_v15  ;;  %v662_v19 = vpop.f32.mrf.mxu2 }
 0x160   : > { %1013 = vpow2.f32 %v705_v16  ;;  %v1370_v20 = vadd.f32 %v662_v19, %v619_v17  ;;  %v691_v21 = vpop.f32.mrf.mxu3  ;;  %v762_v16 = vpop.permute.xlu2 %761 }
 0x161   : > { %v1372_v23 = vadd.f32 %v691_v21, %v619_v17  ;;  %v659_v26 = vpop.f32.mrf.mxu0  ;;  %1015 = vpow2.f32 %v707_v18 }
 0x162   : > { %v701_v29 = vsub.f32 0.0, %v1370_v20  ;;  %v660_v30 = vadd.f32 %v659_v26, %v614_v22  ;;  %v688_v27 = vpop.f32.mrf.mxu1 }
 0x163   : > { %v702_v31 = vsub.f32 0.0, %v1372_v23  ;;  %v689_v32 = vadd.f32 %v688_v27, %v614_v22  ;;  %v767_v22 = vpop.permute.xlu0 %766 }
 0x164   : > { %v713_v28 = vmul.f32 1.442695, %v701_v29  ;;  %v699_v33 = vsub.f32 0.0, %v660_v30 }
 0x165   : > { %v715_v34 = vmul.f32 1.442695, %v702_v31  ;;  %v700_v36 = vsub.f32 0.0, %v689_v32 }
 0x166   : > { %v1014_v37 = vpop.eup %1013  ;;  %1017 = vpow2.f32 %v713_v28  ;;  %v709_v38 = vmul.f32 1.442695, %v699_v33 }
 0x167   : > { %1019 = vpow2.f32 %v715_v34  ;;  %v711_v56 = vmul.f32 1.442695, %v700_v36  ;;  %v665_v57 = vpop.f32.mrf.mxu2  ;;  %v1016_v40 = vpop.eup %1015  ;;  %v721_v43 = vadd.f32 1.0, %v1014_v37 }
 0x168   : > { %1021 = vpow2.f32 %v709_v38  ;;  %v666_v41 = vadd.f32 %v665_v57, %v624_v39  ;;  %v694_v42 = vpop.f32.mrf.mxu3  ;;  %v722_v24 = vadd.f32 1.0, %v1016_v40 }
 0x169   : > { %v695_v44 = vadd.f32 %v694_v42, %v624_v39  ;;  %1023 = vpow2.f32 %v711_v56 }
 0x16a   : > { %v703_v45 = vsub.f32 0.0, %v666_v41  ;;  %1025 = vrcp.f32 %v721_v43 }
 0x16b   : > { %v704_v46 = vsub.f32 0.0, %v695_v44 }
 0x16c   : > { %v1018_v47 = vpop.eup %1017  ;;  %v717_v48 = vmul.f32 1.442695, %v703_v45 }
 0x16d   : > { %v1020_v25 = vpop.eup %1019  ;;  %v725_v49 = vadd.f32 1.0, %v1018_v47  ;;  %v719_v53 = vmul.f32 1.442695, %v704_v46 }
 0x16e   : > { %v1022_v52 = vpop.eup %1021  ;;  %1027 = vpow2.f32 %v717_v48  ;;  %v726_v55 = vadd.f32 1.0, %v1020_v25 }
 0x16f   : > { %1029 = vrcp.f32 %v722_v24  ;;  %v723_v35 = vadd.f32 1.0, %v1022_v52  ;;  %v1024_v54 = vpop.eup %1023  ;;  %v810_v24 = vlaneseq }
 0x170   : > { %1031 = vrcp.f32 %v725_v49  ;;  %v724_v58 = vadd.f32 1.0, %v1024_v54  ;;  %v1026_v50 = vpop.eup %1025 }
 0x171   : > { %1033 = vrcp.f32 %v723_v35  ;;  %v737_v63 = vmul.f32 %v1026_v50, %v1364_v11  ;;  %vm812_vm2 = vcmp.lt.s32.totalorder %v810_v24, 256 }
 0x172   : > { %1035 = vpow2.f32 %v719_v53 }
 0x173   : > { %1037 = vrcp.f32 %v724_v58  ;;  %v769_v6 = vmul.f32 %v752_v61, %v737_v63 }
 0x174   : > { %v1028_v59 = vpop.eup %1027  ;;  %1039 = vrcp.f32 %v726_v55 }
 0x175   : > { %v1030_v60 = vpop.eup %1029  ;;  %v727_v62 = vadd.f32 1.0, %v1028_v59 }
 0x176   : > { %v1032_v51 = vpop.eup %1031  ;;  %v738_v7 = vmul.f32 %v1030_v60, %v1366_v13 }
 0x177   : > { %v1034_v0 = vpop.eup %1033  ;;  %1041 = vrcp.f32 %v727_v62  ;;  %v741_v8 = vmul.f32 %v1032_v51, %v1370_v20 }
 0x178   : > { %v1036_v1 = vpop.eup %1035  ;;  %v739_v2 = vmul.f32 %v1034_v0, %v660_v30  ;;  %v770_v17 = vmul.f32 %v752_v61, %v738_v7 }
 0x179   : > { %v728_v4 = vadd.f32 1.0, %v1036_v1  ;;  %v1038_v5 = vpop.eup %1037  ;;  %v773_v18 = vmul.f32 %v762_v16, %v741_v8 }
 0x17a   : > { %v771_v9 = vmul.f32 %v757_v3, %v739_v2  ;;  %v1040_v10 = vpop.eup %1039  ;;  %v740_v12 = vmul.f32 %v1038_v5, %v689_v32 }
 0x17b   : > { %1043 = vrcp.f32 %v728_v4  ;;  %v742_v19 = vmul.f32 %v1040_v10, %v1372_v23 }
 0x17c   : > { %v777_v14 = vadd.f32 %v771_v9, %v769_v6  ;;  %v772_v11 = vmul.f32 %v757_v3, %v740_v12 }
 0x17d   : > { %v1042_v15 = vpop.eup %1041  ;;  %v774_v20 = vmul.f32 %v762_v16, %v742_v19 }
 0x17e   : > { %v743_v21 = vmul.f32 %v1042_v15, %v666_v41  ;;  %v786_v26 = vadd.f32 %v772_v11, %v770_v17  ;;  %v778_v13 = vadd.f32 %v777_v14, %v773_v18  ;;  %v799_v41 = vpop.permute.xlu1 %798 }
 0x17f   : > { %v801_v43 = vperm.slane %v799_v41, 0 }
 0x180   : > { %v775_v29 = vmul.f32 %v767_v22, %v743_v21  ;;  %v787_v33 = vadd.f32 %v786_v26, %v774_v20 }
 0x181   : > { %v1044_v30 = vpop.eup %1043 }
 0x182   : > { %v779_v27 = vadd.f32 %v778_v13, %v775_v29  ;;  %v744_v31 = vmul.f32 %v1044_v30, %v695_v44 }
 0x184   : > { %v780_v32 = vrot.slane %v779_v27, 4  ;;  %v776_v28 = vmul.f32 %v767_v22, %v744_v31 }
 0x186   : > { %v781_v34 = vadd.f32 %v780_v32, %v779_v27  ;;  %v788_v36 = vadd.f32 %v787_v33, %v776_v28 }
 0x188   : > { %v782_v37 = vrot.slane %v781_v34, 2  ;;  %v789_v38 = vrot.slane %v788_v36, 4 }
 0x18a   : > { %v783_v39 = vadd.f32 %v782_v37, %v781_v34  ;;  %v790_v23 = vadd.f32 %v789_v38, %v788_v36 }
 0x18c   : > { %v791_v56 = vrot.slane %v790_v23, 2  ;;  %v784_v57 = vrot.slane %v783_v39, 1 }
 0x18e   : > { %v792_v40 = vadd.f32 %v791_v56, %v790_v23  ;;  %v785_v45 = vadd.f32 %v784_v57, %v783_v39 }
 0x190   : > { %v793_v42 = vrot.slane %v792_v40, 1  ;;  %v802_v47 = vadd.f32 %v801_v43, %v785_v45 }
 0x192   : > { %v794_v44 = vadd.f32 %v793_v42, %v792_v40 }
 0x194   : > { %v803_v46 = vadd.f32 %v801_v43, %v794_v44 }
 0x196   : > { %v806_v48 = vrot.slane %v803_v46, 7 }
 0x198   : > { %v808_v25 = vsel %vm807_vm1, %v802_v47, %v806_v48 }
 0x199   : > { %814 = vst.msk [vmem:[%s328_s24] sm:$0x3] %vm812_vm2, %v808_v25 }
 0x19a   : > { %1072 = shalt.err (!%p1069_p3)
}
 0x19b   : > { %917 = dma.vmem_to_hbm [thread:$0]  (%p1201_p5), %s829_s25, 32, %s831_s26, %s816_s8  }
 0x19c PF: > { %p923_p4 = scmp.ge.s32.totalorder %s1107_s14, 2  ;;  %s842_s10 = sand.u32 1, %s1095_s11  }
 0x19d   : > { %s843_s22 = scalar_lea.sflag [#allocation4], %s842_s10 }
 0x19e   : > { %p920_p7 = pnand %p923_p4, %p1205_p6 }
 0x1a0   : > { %p921_p8 = pneg %p920_p7 }
 0x1a2   : > { %1090 = dma.done.wait (%p921_p8), %s843_s22, 32  }
 0x1a3   : > { %1092 = vsyncadd (%p921_p8), %s843_s22, 4294967264  ;;  %p21_p9 = scmp.ge.s32.totalorder %s1187_s16, 4   ;;  %s1424_s11 = smov %s1099_s12 }
 0x1a4   : > { %s1425_s12 = smov %s1103_s13  ;;  %s1426_s13 = smov %s1199_s19 }
 0x1a5   : > { %s1427_s14 = smov %s1187_s16  ;;  %23 = sbr.rel (!%p21_p9) target bundleno = 6 (0x6), region = 91 }
 0x1aa   :  { %849 = vsyncpa [#allocation4], 1 }
 0x1ab   :  { %851 = vsyncpa [#allocation4 + $0x1], 1 }

</bundles_post_ra>
